<compile_context>
chip_gen: v6e
topology: v6e:2x2x1
jax: 0.10.0
libtpu: 0.0.40
codegen_flags: <defaults>
</compile_context>

<pallas_src>
from functools import partial

import jax
import jax.numpy as jnp
from jax.experimental import pallas as pl
from jax.experimental.pallas import tpu as pltpu


def _attn_kernel(hidden_ref, enc_ref, w_ref, b_ref, *rest, use_mask):
    if use_mask:
        mask_ref, ctx_ref, attn_ref = rest
    else:
        ctx_ref, attn_ref = rest

    hidden = hidden_ref[...]                     # [bn, D]   (native dtype)
    enc = enc_ref[...]                           # [bn, T, D]
    w = w_ref[...]                               # [D, D]    (PyTorch Linear weight: [out, in])
    b = b_ref[...]                               # [1, D]

    # ---- Fold `hidden` into the linear layer (exact algebraic rewrite) ----
    #   energy[n,t,:] = enc[n,t,:] @ W^T + b
    #   score[n,t]    = <hidden[n,:], energy[n,t,:]>
    #                 = enc[n,t,:] . (hidden[n,:] @ W) + <hidden[n,:], b>
    # -> the [bn,T,D] energy tensor is never built; the only matmul is [bn,D]x[D,D] (MXU).
    w_mm = w if w.dtype == hidden.dtype else w.astype(hidden.dtype)
    u = jax.lax.dot_general(
        hidden, w_mm, (((1,), (0,)), ((), ())),
        preferred_element_type=jnp.float32)                          # [bn, D] f32
    c = jnp.sum(hidden.astype(jnp.float32) * b.astype(jnp.float32),
                axis=1, keepdims=True)                               # [bn, 1]

    enc_f32 = enc.astype(jnp.float32)
    # score[n,t] = enc[n,t,:] . u[n,:] + c[n]
    score = jnp.sum(enc_f32 * u[:, None, :], axis=2) + c             # [bn, T]

    # softmax over T (f32)
    m = jnp.max(score, axis=1, keepdims=True)
    p = jnp.exp(score - m)
    attn = p / jnp.sum(p, axis=1, keepdims=True)                     # [bn, T]

    if use_mask:
        mask = mask_ref[...].astype(jnp.float32)                     # [bn, T]
        a = attn * mask
        a_sum = jnp.maximum(jnp.sum(a, axis=1, keepdims=True), jnp.float32(1e-5))
        attn = a / a_sum

    # context[n,d] = sum_t attn[n,t] * enc[n,t,d]
    ctx = jnp.sum(attn[:, :, None] * enc_f32, axis=1)                # [bn, D]

    ctx_ref[...] = ctx.astype(ctx_ref.dtype)
    attn_ref[...] = attn.astype(attn_ref.dtype)


def _choose_block_n(N, T, D, itemsize, budget_bytes=4 << 20):
    """Pick an N-tile so double-buffered enc tiles stay far below every chip's
    scoped-VMEM default (v5e 16 MiB is the tightest; v7x has 64 MiB physical).
    Accounts for lane padding to 128 and sublane padding to 8."""
    bytes_per_row = 2 * max(T, 8) * max(D, 128) * itemsize           # 2x = double buffer
    bn = max(1, budget_bytes // bytes_per_row)
    bn = min(int(bn), N)
    if bn < N and bn % 8 != 0:                                       # obey the (8,128) rule
        bn = max(8, (bn // 8) * 8)
        bn = min(bn, N)
    return bn


def attn_forward(hidden, ori_encoder_outputs, weight, bias, mask=None, *, block_n=None):
    """Returns (context [N, D], attn [N, T]) exactly like Attn.forward."""
    enc = ori_encoder_outputs
    N, T, D = enc.shape
    use_mask = mask is not None
    itemsize = jnp.dtype(enc.dtype).itemsize

    if block_n is None:
        block_n = _choose_block_n(N, T, D, itemsize)
    else:
        block_n = min(int(block_n), N)
        if block_n < N and block_n % 8 != 0:
            block_n = max(8, (block_n // 8) * 8)
            block_n = min(block_n, N)

    grid = (pl.cdiv(N, block_n),)

    inputs = [hidden, enc, weight, bias.reshape(1, D)]
    in_specs = [
        pl.BlockSpec((block_n, D), lambda i: (i, 0)),        # hidden
        pl.BlockSpec((block_n, T, D), lambda i: (i, 0, 0)),  # enc
        pl.BlockSpec((D, D), lambda i: (0, 0)),              # W (resident, full block)
        pl.BlockSpec((1, D), lambda i: (0, 0)),              # b
    ]
    if use_mask:
        inputs.append(mask)
        in_specs.append(pl.BlockSpec((block_n, T), lambda i: (i, 0)))

    out_specs = (
        pl.BlockSpec((block_n, D), lambda i: (i, 0)),        # context
        pl.BlockSpec((block_n, T), lambda i: (i, 0)),        # attention weights
    )
    out_shape = (
        jax.ShapeDtypeStruct((N, D), enc.dtype),
        jax.ShapeDtypeStruct((N, T), jnp.float32),
    )

    # Advisory cost model: one [N,D]x[D,D] matmul, two N*T*D contractions, N*T exps.
    flops = int(2 * N * D * D + 4 * N * T * D + 6 * N * T)
    transcendentals = int(N * T)
    bytes_accessed = int(
        (N * T * D + N * D + D * D + D) * itemsize
        + (N * T * jnp.dtype(mask.dtype).itemsize if use_mask else 0)
        + N * D * itemsize + N * T * 4)
    cost = pl.CostEstimate(flops=flops, transcendentals=transcendentals,
                           bytes_accessed=bytes_accessed)

    ctx, attn = pl.pallas_call(
        partial(_attn_kernel, use_mask=use_mask),
        grid=grid,
        in_specs=in_specs,
        out_specs=out_specs,
        out_shape=out_shape,
        compiler_params=pltpu.CompilerParams(dimension_semantics=("parallel",)),
        cost_estimate=cost,
    )(*inputs)
    return ctx, attn


def _attn_reference(hidden, enc, weight, bias, mask=None):
    """Pure-JAX mirror of the PyTorch forward for verification."""
    energy = jnp.einsum("ntk,dk->ntd", enc, weight) + bias[None, None, :]
    score = jnp.sum(hidden[:, None, :] * energy, axis=2)             # [N, T]
    attn = jax.nn.softmax(score, axis=1)
    if mask is not None:
        a = attn * mask
        a_sum = jnp.maximum(jnp.sum(a, axis=1, keepdims=True), 1e-5)
        attn = a / a_sum
    ctx = jnp.einsum("nt,ntd->nd", attn, enc)
    return ctx, attn


if __name__ == "__main__":
    def run_case(N, T, D, seed, block_n=None):
        key = jax.random.PRNGKey(seed)
        k_h, k_e, k_w, k_b, k_m = jax.random.split(key, 5)
        hidden = jax.random.normal(k_h, (N, D), dtype=jnp.float32)
        enc = jax.random.normal(k_e, (N, T, D), dtype=jnp.float32)
        bound = 1.0 / (D ** 0.5)  # deterministic nn.Linear-style init
        weight = jax.random.uniform(k_w, (D, D), jnp.float32, -bound, bound)  # [out, in]
        bias = jax.random.uniform(k_b, (D,), jnp.float32, -bound, bound)
        mask = (jax.random.uniform(k_m, (N, T)) > 0.3).astype(jnp.float32)

        # no-mask path
        ctx, attn = attn_forward(hidden, enc, weight, bias, mask=None, block_n=block_n)
        jax.block_until_ready((ctx, attn))
        ctx_r, attn_r = _attn_reference(hidden, enc, weight, bias, mask=None)
        assert jnp.allclose(ctx, ctx_r, atol=1e-4, rtol=1e-4)
        assert jnp.allclose(attn, attn_r, atol=2e-5, rtol=1e-4)

        # masked path
        ctx_m, attn_m = attn_forward(hidden, enc, weight, bias, mask=mask, block_n=block_n)
        jax.block_until_ready((ctx_m, attn_m))
        ctx_mr, attn_mr = _attn_reference(hidden, enc, weight, bias, mask=mask)
        assert jnp.allclose(ctx_m, ctx_mr, atol=1e-4, rtol=1e-4)
        assert jnp.allclose(attn_m, attn_mr, atol=2e-5, rtol=1e-4)

    # Small shapes implied by the module: batch=2, seq=8, hidden=32 (single grid step).
    run_case(N=2, T=8, D=32, seed=0)
    # Slightly larger batch with block_n=8 to exercise the multi-step (tiled) grid path.
    run_case(N=16, T=8, D=32, seed=0, block_n=8)

    print("KERNEL_OK")
</pallas_src>

<mosaic_0001>
module attributes {stable_mosaic.version = 11 : i64} {
  func.func @_attn_kernel(%arg0: i32, %arg1: memref<2x32xf32, #tpu.memory_space<vmem>>, %arg2: memref<2x8x32xf32, #tpu.memory_space<vmem>>, %arg3: memref<32x32xf32, #tpu.memory_space<vmem>>, %arg4: memref<1x32xf32, #tpu.memory_space<vmem>>, %arg5: memref<2x32xf32, #tpu.memory_space<vmem>>, %arg6: memref<2x8xf32, #tpu.memory_space<vmem>>) attributes {dimension_semantics = [#tpu.dimension_semantics<parallel>], iteration_bounds = array<i64: 1>, scalar_prefetch = 0 : i64, scratch_operands = 0 : i64, tpu.core_type = #tpu.core_type<tc>, window_params = [{transform_indices = @transform_0, window_bounds = array<i64: 2, 32>}, {transform_indices = @transform_1, window_bounds = array<i64: 2, 8, 32>}, {pipeline_mode = #tpu.pipeline_mode<synchronous>, transform_indices = @transform_2, window_bounds = array<i64: 32, 32>}, {pipeline_mode = #tpu.pipeline_mode<synchronous>, transform_indices = @transform_3, window_bounds = array<i64: 1, 32>}, {transform_indices = @transform_4, window_bounds = array<i64: 2, 32>}, {transform_indices = @transform_5, window_bounds = array<i64: 2, 8>}]} {
    %c0 = arith.constant 0 : index
    %c0_0 = arith.constant 0 : index
    %0 = vector.load %arg1[%c0, %c0_0] : memref<2x32xf32, #tpu.memory_space<vmem>>, vector<2x32xf32>
    %c0_1 = arith.constant 0 : index
    %c0_2 = arith.constant 0 : index
    %c0_3 = arith.constant 0 : index
    %1 = vector.load %arg2[%c0_1, %c0_2, %c0_3] : memref<2x8x32xf32, #tpu.memory_space<vmem>>, vector<2x8x32xf32>
    %c0_4 = arith.constant 0 : index
    %c0_5 = arith.constant 0 : index
    %2 = vector.load %arg3[%c0_4, %c0_5] : memref<32x32xf32, #tpu.memory_space<vmem>>, vector<32x32xf32>
    %c0_6 = arith.constant 0 : index
    %c0_7 = arith.constant 0 : index
    %3 = vector.load %arg4[%c0_6, %c0_7] : memref<1x32xf32, #tpu.memory_space<vmem>>, vector<1x32xf32>
    %cst = arith.constant dense<0.000000e+00> : vector<2x32xf32>
    %4 = tpu.matmul %0, %2, %cst {dimension_numbers = #tpu.dot_dimension_numbers<[1], [0], [0], [1], [0, 0, 1, 1], [], []>} : vector<2x32xf32>, vector<32x32xf32>, vector<2x32xf32> -> vector<2x32xf32>
    %5 = vector.broadcast %3 : vector<1x32xf32> to vector<2x32xf32>
    %6 = arith.mulf %0, %5 : vector<2x32xf32>
    %cst_8 = arith.constant dense<0.000000e+00> : vector<2xf32>
    %7 = vector.multi_reduction <add>, %6, %cst_8 [1] : vector<2x32xf32> to vector<2xf32>
    %8 = vector.shape_cast %7 : vector<2xf32> to vector<2x1xf32>
    %9 = vector.shape_cast %4 : vector<2x32xf32> to vector<2x1x32xf32>
    %10 = vector.broadcast %9 : vector<2x1x32xf32> to vector<2x8x32xf32>
    %11 = arith.mulf %1, %10 : vector<2x8x32xf32>
    %cst_9 = arith.constant dense<0.000000e+00> : vector<2x8xf32>
    %12 = vector.multi_reduction <add>, %11, %cst_9 [2] : vector<2x8x32xf32> to vector<2x8xf32>
    %13 = vector.broadcast %8 : vector<2x1xf32> to vector<2x8xf32>
    %14 = arith.addf %12, %13 : vector<2x8xf32>
    %cst_10 = arith.constant dense<0xFF800000> : vector<2xf32>
    %15 = vector.multi_reduction <maximumf>, %14, %cst_10 [1] : vector<2x8xf32> to vector<2xf32>
    %16 = vector.shape_cast %15 : vector<2xf32> to vector<2x1xf32>
    %17 = vector.broadcast %16 : vector<2x1xf32> to vector<2x8xf32>
    %18 = arith.subf %14, %17 : vector<2x8xf32>
    %19 = math.exp %18 : vector<2x8xf32>
    %cst_11 = arith.constant dense<0.000000e+00> : vector<2xf32>
    %20 = vector.multi_reduction <add>, %19, %cst_11 [1] : vector<2x8xf32> to vector<2xf32>
    %21 = vector.shape_cast %20 : vector<2xf32> to vector<2x1xf32>
    %22 = vector.broadcast %21 : vector<2x1xf32> to vector<2x8xf32>
    %23 = arith.divf %19, %22 : vector<2x8xf32>
    %24 = vector.shape_cast %23 : vector<2x8xf32> to vector<2x8x1xf32>
    %25 = vector.broadcast %24 : vector<2x8x1xf32> to vector<2x8x32xf32>
    %26 = arith.mulf %25, %1 : vector<2x8x32xf32>
    %cst_12 = arith.constant dense<0.000000e+00> : vector<2x32xf32>
    %27 = vector.multi_reduction <add>, %26, %cst_12 [1] : vector<2x8x32xf32> to vector<2x32xf32>
    %c0_13 = arith.constant 0 : index
    %c0_14 = arith.constant 0 : index
    %28 = vector.load %arg5[%c0_13, %c0_14] : memref<2x32xf32, #tpu.memory_space<vmem>>, vector<2x32xf32>
    tpu.vector_store %arg5[%c0_13, %c0_14], %27 {strides = array<i32>} : memref<2x32xf32, #tpu.memory_space<vmem>>, vector<2x32xf32>,
    %c0_15 = arith.constant 0 : index
    %c0_16 = arith.constant 0 : index
    %29 = vector.load %arg6[%c0_15, %c0_16] : memref<2x8xf32, #tpu.memory_space<vmem>>, vector<2x8xf32>
    tpu.vector_store %arg6[%c0_15, %c0_16], %23 {strides = array<i32>} : memref<2x8xf32, #tpu.memory_space<vmem>>, vector<2x8xf32>,
    return
  }
  func.func @transform_0(%arg0: i32) -> (i32, i32) {
    %c0_i32 = arith.constant 0 : i32
    %c0_i32_0 = arith.constant 0 : i32
    return %arg0, %c0_i32 : i32, i32
  }
  func.func @transform_1(%arg0: i32) -> (i32, i32, i32) {
    %c0_i32 = arith.constant 0 : i32
    %c0_i32_0 = arith.constant 0 : i32
    %c0_i32_1 = arith.constant 0 : i32
    return %arg0, %c0_i32, %c0_i32_0 : i32, i32, i32
  }
  func.func @transform_2(%arg0: i32) -> (i32, i32) {
    %c0_i32 = arith.constant 0 : i32
    %c0_i32_0 = arith.constant 0 : i32
    %c0_i32_1 = arith.constant 0 : i32
    return %c0_i32, %c0_i32_0 : i32, i32
  }
  func.func @transform_3(%arg0: i32) -> (i32, i32) {
    %c0_i32 = arith.constant 0 : i32
    %c0_i32_0 = arith.constant 0 : i32
    %c0_i32_1 = arith.constant 0 : i32
    return %c0_i32, %c0_i32_0 : i32, i32
  }
  func.func @transform_4(%arg0: i32) -> (i32, i32) {
    %c0_i32 = arith.constant 0 : i32
    %c0_i32_0 = arith.constant 0 : i32
    return %arg0, %c0_i32 : i32, i32
  }
  func.func @transform_5(%arg0: i32) -> (i32, i32) {
    %c0_i32 = arith.constant 0 : i32
    %c0_i32_0 = arith.constant 0 : i32
    return %arg0, %c0_i32 : i32, i32
  }
}

</mosaic_0001>

<bundles_post_ra>
// kernel: tpu_custom_call.1
= control target key start
LH: loop header
LB: loop body
LE: loop exit
PB: predicated region body
PF: predicated region fallthrough
CT: control target
= control target key end

     0   :  { %11 = vsyncpa [#allocation3], 0  ;;  %s585_s0 = inlined_call_operand.hbm [shape: f32[2,32], index: 0, kind: input, shape index: {}]   ;;  %s586_s1 = inlined_call_operand.hbm [shape: f32[2,8,32], index: 1, kind: input, shape index: {}]   ;;  %s587_s2 = inlined_call_operand.hbm [shape: f32[32,32], index: 2, kind: input, shape index: {}]   ;;  %s588_s3 = inlined_call_operand.vmem [shape: f32[1,32], index: 3, kind: input, shape index: {}]   ;;  %s589_s4 = inlined_call_operand.hbm [shape: f32[2,32], index: 4, kind: output, shape index: {0}]   ;;  %s590_s5 = inlined_call_operand.hbm [shape: f32[2,8], index: 5, kind: output, shape index: {1}]  }
   0x1   :  { %12 = vsyncpa [#allocation6], 0 }
   0x2   :  { %13 = vsyncpa [#allocation4], 0 }
   0x3   :  { %14 = vsyncpa [#allocation10], 0  ;;  %s504_s18 = smov [#allocation5]  }
   0x4   :  { %s30_s19 = sshll.u32 %s504_s18, 4  ;;  %s31_s19 = int_to_ptr.vmem [resolvable:$true] %s30_s19 }
   0x5   :  { %s404_s20 = scalar_lea.vmem %s31_s19, 256  ;;  %p409_p1 = scmp.lt.s32.totalorder %s31_s19, %s31_s19 }
   0x6   :  { %p405_p0 = scmp.ne.s32.totalorder %s31_s19, %s404_s20  ;;  %p410_p2 = scmp.lt.s32.totalorder %s404_s20, %s404_s20 }
   0x8   :  { %p411_p3 = por %p410_p2, %p409_p1 }
   0xa   :  { %p412_p4 = pnand %p411_p3, %p405_p0 }
   0xc   :  { %415 = shalt.err (!%p412_p4)
}
   0xd   :  { %s505_s21 = smov 128   ;;  %s506_s22 = smov 8  }
   0xe   :  { %36 = dma.hbm_to_vmem [thread:$0]  %s586_s1, 256, %s31_s19, [#allocation6], %s505_s21, %s505_s21, %s506_s22  }
   0xf   :  { %s507_s25 = smov [#allocation2]   ;;  %s508_s27 = smov [#allocation7]  }
  0x10   :  { %s21_s26 = sshll.u32 %s507_s25, 4  ;;  %s42_s28 = sshll.u32 %s508_s27, 4  ;;  %s22_s26 = int_to_ptr.vmem [resolvable:$true] %s21_s26  ;;  %s43_s28 = int_to_ptr.vmem [resolvable:$true] %s42_s28 }
  0x11   :  { %s424_s29 = scalar_lea.vmem %s22_s26, 32  ;;  %p429_p6 = scmp.lt.s32.totalorder %s22_s26, %s22_s26 }
  0x12   :  { %p425_p5 = scmp.ne.s32.totalorder %s22_s26, %s424_s29  ;;  %p430_p7 = scmp.lt.s32.totalorder %s424_s29, %s424_s29 }
  0x14   :  { %p431_p8 = por %p430_p7, %p429_p6 }
  0x16   :  { %p432_p9 = pnand %p431_p8, %p425_p5 }
  0x18   :  { %435 = shalt.err (!%p432_p9)
}
  0x19   :  { %24 = dma.hbm_to_vmem [thread:$0]  %s585_s0, 32, %s22_s26, [#allocation3]  }
  0x1a   :  { %s444_s7 = scalar_lea.vmem %s43_s28, 512  ;;  %p449_p11 = scmp.lt.s32.totalorder %s43_s28, %s43_s28 }
  0x1b   :  { %p445_p10 = scmp.ne.s32.totalorder %s43_s28, %s444_s7  ;;  %p450_p12 = scmp.lt.s32.totalorder %s444_s7, %s444_s7 }
  0x1d   :  { %p451_p13 = por %p450_p12, %p449_p11 }
  0x1f   :  { %p452_p0 = pnand %p451_p13, %p445_p10 }
  0x21   :  { %455 = shalt.err (!%p452_p0)
}
  0x22   :  { %48 = dma.hbm_to_vmem [thread:$0]  %s587_s2, 512, %s43_s28, [#allocation6], %s505_s21, %s505_s21, %s506_s22  }
  0x23   :  { %496 = dma.done.wait [#allocation3], 32  }
  0x24   :  { %497 = vsyncadd [#allocation3], 4294967264 }
  0x25   :  { %498 = dma.done.wait [#allocation6], 768  }
  0x26   :  { %499 = vsyncadd [#allocation6], 4294966528  ;;  %v509_v0 = vmov 0.0   ;;  %vm510_vm0 = vmmov 0   ;;  %v66_v1 = vld [vmem:[#allocation7 + $0x18] sm:$0xff]  ;;  %v65_v2 = vld [vmem:[#allocation7 + $0x10] sm:$0xff]  ;;  %v157_v11 = vlaneseq }
  0x27   :  { %364 = vmatprep.subr.mxu0 %v509_v0  ;;  %372 = vmatprep.mubr.msk.f32.mxu0 %vm510_vm0, %v509_v0  ;;  %v64_v3 = vld [vmem:[#allocation7 + $0x8] sm:$0xff]  ;;  %v63_v4 = vld [vmem:[#allocation7] sm:$0xff]  ;;  %vm68_vm1 = vcmask 261120   ;;  %vm149_vm2 = vcmask 254976   ;;  %v511_v9 = vmov 1966171168  }
  0x28   :  { %365 = vmatpush3.msra.mxu0 %v66_v1  ;;  %v60_v5 = vld [vmem:[#allocation2] sm:$0x3]  ;;  %v155_v10 = vunpack.c.l.s4 %v511_v9  ;;  %v158_v13 = vshrl.u32 %v157_v11, 7  ;;  %v559_v21 = vld [vmem:[#allocation5] sm:$0xff]  ;;  %v561_v24 = vld [vmem:[#allocation5 + $0x8] sm:$0xff]  ;;  %v512_v30 = vmov 0  }
  0x29   :  { %366 = vmatprep.subr.mxu0 %v509_v0  ;;  %v358_v6 = vld [vmem:[%s588_s3] ss:$0 sm:$0xff]  ;;  %386 = vset.pattern.permute.xlu1 %v512_v30  ;;  %v216_v39 = vand.u32 127, %v157_v11  ;;  %vm225_vm3 = vcmask 1041409   ;;  %vm228_vm4 = vcmask 58368   ;;  %s513_s3 = smov [#allocation9]  }
  0x2a   :  { %367 = vmatpush3.msra.mxu0 %v65_v2  ;;  %v148_v7 = vmul.f32 %v358_v6, %v60_v5  ;;  %v156_v12 = vunpack.c.0.s8 %v155_v10  ;;  %v178_v17 = vsub.s32 0, %v158_v13  ;;  %387 = vset.pattern.permute.xlu0 %v512_v30  ;;  %v201_v32 = vsub.s32 1, %v158_v13  ;;  %s343_s9 = sshll.u32 %s513_s3, 4  ;;  %s344_s9 = int_to_ptr.vmem [resolvable:$true] %s343_s9 }
  0x2b   :  { %368 = vmatprep.subr.mxu0 %v509_v0  ;;  %v219_v40 = vsub.s32 %v216_v39, %v158_v13  ;;  %s456_s10 = scalar_lea.vmem %s344_s9, 32  ;;  %p461_p2 = scmp.lt.s32.totalorder %s344_s9, %s344_s9 }
  0x2c   :  { %369 = vmatpush3.msra.mxu0 %v64_v3  ;;  %v150_v8 = vsel %vm149_vm2, %v148_v7, 0.0  ;;  %v159_v14 = vsub.s32 %v156_v12, %v158_v13  ;;  %p457_p1 = scmp.ne.s32.totalorder %s344_s9, %s456_s10  ;;  %p462_p3 = scmp.lt.s32.totalorder %s456_s10, %s456_s10 }
  0x2d   :  { %370 = vmatprep.subr.mxu0 %v509_v0  ;;  %151 = vadd.xlane.f32.xlu0 %v150_v8 }
  0x2e   :  { %371 = vmatpush3.msra.mxu0 %v63_v4  ;;  %p463_p4 = por %p462_p3, %p461_p2 }
  0x2f   :  { %373 = vmatmul.mubr.msk.f32.vlgmr.msra.gmra.mxu0 %vm68_vm1, %v60_v5 }
  0x30   :  { %p464_p5 = pnand %p463_p4, %p457_p1 }
  0xb6   :  { %v152_v31 = vpop.xlane.xlu0 %151 }
  0xb7   :  { %v198_v33 = vrot.slane %v152_v31, %v178_v17  ;;  %v202_v35 = vrot.slane %v152_v31, %v201_v32 }
  0xef   :  { %v138_v15 = vpop.f32.mrf.mxu0 }
  0xf0   :  { %v160_v16 = vrot.slane %v138_v15, %v159_v14 }
  0xf1   :  { %v374_v18 = vpop.f32.mrf.mxu0 }
  0xf2   :  { %v161_v19 = vcombine.high %v160_v16, %v160_v16  ;;  %v168_v20 = vrot.slane %v160_v16, %v159_v14 }
  0xf4   :  { %v175_v22 = vrot.slane %v161_v19, %v159_v14  ;;  %v179_v23 = vrot.slane %v168_v20, %v178_v17 }
  0xf6   :  { %v186_v25 = vmul.f32 %v179_v23, %v559_v21  ;;  %v183_v26 = vrot.slane %v175_v22, %v178_v17 }
  0xf8   :  { %v188_v27 = vsel %vm68_vm1, %v186_v25, 0.0  ;;  %v187_v28 = vmul.f32 %v183_v26, %v561_v24 }
  0xf9   :  { %189 = vadd.xlane.f32.xlu0 %v188_v27 }
  0xfa   :  { %v191_v29 = vsel %vm68_vm1, %v187_v28, 0.0 }
  0xfb   :  { %192 = vadd.xlane.f32.xlu1 %v191_v29 }
 0x182   :  { %v190_v34 = vpop.xlane.xlu0 %189 }
 0x183   :  { %v205_v36 = vadd.f32 %v198_v33, %v190_v34 }
 0x184   :  { %v193_v37 = vpop.xlane.xlu1 %192 }
 0x185   :  { %v206_v38 = vadd.f32 %v202_v35, %v193_v37  ;;  %210 = vperm.xlu1 %386, %v205_v36  }
 0x187   :  { %213 = vperm.xlu0 %387, %v206_v38  }
 0x200   :  { %v211_v41 = vpop.permute.xlu1 %210 }
 0x201   :  { %v220_v43 = vrot.slane %v211_v41, %v219_v40 }
 0x202   :  { %v214_v42 = vpop.permute.xlu0 %213 }
 0x203   :  { %v224_v44 = vrot.slane %v214_v42, %v219_v40 }
 0x205   :  { %v226_v45 = vsel %vm225_vm3, %v224_v44, %v220_v43 }
 0x206   :  { %v229_v46 = vsel %vm228_vm4, %v226_v45, -inf }
 0x207   :  { %230 = vmax.xlane.f32.xlu1 %v229_v46 }
 0x290   :  { %v231_v47 = vpop.xlane.xlu1 %230 }
 0x291   :  { %v236_v48 = vrot.slane %v231_v47, %v178_v17  ;;  %v240_v49 = vrot.slane %v231_v47, %v201_v32 }
 0x293   :  { %v243_v50 = vsub.f32 %v205_v36, %v236_v48  ;;  %v244_v51 = vsub.f32 %v206_v38, %v240_v49 }
 0x295   :  { %v245_v52 = vmul.f32 1.442695, %v243_v50  ;;  %v247_v53 = vmul.f32 1.442695, %v244_v51 }
 0x297   :  { %388 = vpow2.f32 %v245_v52 }
 0x298   :  { %390 = vpow2.f32 %v247_v53 }
 0x2a4   :  { %v389_v54 = vpop.eup %388 }
 0x2a5   :  { %252 = vperm.xlu0 %387, %v389_v54   ;;  %v391_v55 = vpop.eup %390 }
 0x2a9   :  { %255 = vperm.xlu0 %387, %v391_v55  }
 0x320   :  { %v253_v56 = vpop.permute.xlu0 %252 }
 0x321   :  { %v260_v58 = vrot.slane %v253_v56, %v219_v40 }
 0x324   :  { %v256_v57 = vpop.permute.xlu0 %255 }
 0x325   :  { %v264_v59 = vrot.slane %v256_v57, %v219_v40 }
 0x327   :  { %v265_v60 = vsel %vm225_vm3, %v264_v59, %v260_v58 }
 0x328   :  { %v267_v61 = vsel %vm228_vm4, %v265_v60, 0.0 }
 0x329   :  { %268 = vadd.xlane.f32.xlu1 %v267_v61 }
 0x3b2   :  { %v269_v62 = vpop.xlane.xlu1 %268 }
 0x3b3   :  { %v274_v63 = vrot.slane %v269_v62, %v178_v17  ;;  %v278_v0 = vrot.slane %v269_v62, %v201_v32 }
 0x3b5   :  { %392 = vrcp.f32 %v274_v63 }
 0x3b6   :  { %394 = vrcp.f32 %v278_v0 }
 0x3c2   :  { %v393_v1 = vpop.eup %392 }
 0x3c3   :  { %v395_v2 = vpop.eup %394  ;;  %v282_v3 = vmul.f32 %v393_v1, %v389_v54 }
 0x3c4   :  { %v284_v4 = vmul.f32 %v395_v2, %v391_v55 }
 0x3c5   :  { %287 = vperm.xlu0 %387, %v282_v3  }
 0x3c6   :  { %292 = vperm.xlu1 %386, %v284_v4  }
 0x440   :  { %v288_v5 = vpop.permute.xlu0 %287 }
 0x441   :  { %v293_v6 = vpop.permute.xlu1 %292  ;;  %v295_v7 = vmul.f32 %v288_v5, %v559_v21  ;;  %v319_v8 = vrot.slane %v288_v5, %v219_v40 }
 0x442   :  { %v296_v9 = vmul.f32 %v293_v6, %v561_v24  ;;  %v323_v10 = vrot.slane %v293_v6, %v219_v40 }
 0x443   :  { %v297_v11 = vsel %vm68_vm1, %v295_v7, 0.0 }
 0x444   :  { %v304_v12 = vsel %vm68_vm1, %v296_v9, 0.0  ;;  %v298_v13 = vrot.slane %v297_v11, 4  ;;  %v324_v14 = vsel %vm225_vm3, %v323_v10, %v319_v8 }
 0x445   :  { %v305_v15 = vrot.slane %v304_v12, 4  ;;  %326 = vst.msk [vmem:[#allocation9] sm:$0x3] %vm228_vm4, %v324_v14 }
 0x446   :  { %v299_v16 = vadd.f32 %v298_v13, %v297_v11 }
 0x447   :  { %467 = shalt.err (!%p464_p5)
}
 0x448   :  { %346 = dma.vmem_to_hbm [thread:$0]  %s344_s9, 32, %s590_s5, [#allocation10]   ;;  %v306_v17 = vadd.f32 %v305_v15, %v304_v12  ;;  %v300_v18 = vrot.slane %v299_v16, 2 }
 0x449   :  { %s514_s13 = smov [#allocation8]  }
 0x44a   :  { %v307_v19 = vrot.slane %v306_v17, 2  ;;  %v301_v20 = vadd.f32 %v300_v18, %v299_v16  ;;  %s333_s14 = sshll.u32 %s514_s13, 4  ;;  %s334_s14 = int_to_ptr.vmem [resolvable:$true] %s333_s14 }
 0x44b   :  { %s476_s15 = scalar_lea.vmem %s334_s14, 32  ;;  %p481_p7 = scmp.lt.s32.totalorder %s334_s14, %s334_s14 }
 0x44c   :  { %v308_v21 = vadd.f32 %v307_v19, %v306_v17  ;;  %v302_v22 = vrot.slane %v301_v20, 1  ;;  %p477_p6 = scmp.ne.s32.totalorder %s334_s14, %s476_s15  ;;  %p482_p8 = scmp.lt.s32.totalorder %s476_s15, %s476_s15 }
 0x44e   :  { %v309_v23 = vrot.slane %v308_v21, 1  ;;  %v303_v24 = vadd.f32 %v302_v22, %v301_v20  ;;  %p483_p9 = por %p482_p8, %p481_p7 }
 0x450   :  { %v310_v25 = vadd.f32 %v309_v23, %v308_v21  ;;  %p484_p10 = pnand %p483_p9, %p477_p6 }
 0x452   :  { %v313_v26 = vsel %vm225_vm3, %v310_v25, %v303_v24 }
 0x453   :  { %315 = vst.msk [vmem:[#allocation8] sm:$0x3] %vm149_vm2, %v313_v26 }
 0x454   :  { %487 = shalt.err (!%p484_p10)
}
 0x455   :  { %336 = dma.vmem_to_hbm [thread:$0]  %s334_s14, 32, %s589_s4, [#allocation4]  }
 0x456   :  { %500 = dma.done.wait [#allocation4], 32  }
 0x457   :  { %501 = vsyncadd [#allocation4], 4294967264 }
 0x458   :  { %502 = dma.done.wait [#allocation10], 32  }
 0x459   :  { %503 = vsyncadd [#allocation10], 4294967264 }
 0x45a   :  { %353 = vsyncpa [#allocation3], 1 }
 0x45b   :  { %354 = vsyncpa [#allocation6], 1 }
 0x45c   :  { %355 = vsyncpa [#allocation4], 1 }
 0x45d   :  { %356 = vsyncpa [#allocation10], 1 }

</bundles_post_ra>
